<compile_context>
chip_gen: v7x
topology: tpu7x:2x2x1
jax: 0.10.0
libtpu: 0.0.40
codegen_flags: <defaults>
</compile_context>

<pallas_src>
import functools

import jax
import jax.numpy as jnp
from jax.experimental import pallas as pl
from jax.experimental.pallas import tpu as pltpu

VMEM = pltpu.MemorySpace.VMEM
SMEM = pltpu.MemorySpace.SMEM


# --------------------------------------------------------------------------
# One-time weight preparation kernel (inference constants, NOT in forward)
# --------------------------------------------------------------------------

def _weight_quant_kernel(w_ref, codes_ref, deq_ref, scale_ref, *, qmax):
    """Per-tensor symmetric narrow-range weight fake quantization.

    Emits integer codes, dequantized weights and the scale so the caller can
    pick whichever representation the forward kernel wants."""
    w = w_ref[...]
    s = jnp.maximum(jnp.max(jnp.abs(w)), 2e-16) / qmax      # scaling_min_val = 2e-16
    codes = jnp.clip(jnp.round(w / s), -qmax, qmax)
    codes_ref[...] = codes
    deq_ref[...] = codes * s
    scale_ref[...] = jnp.full((1, 1), 1.0, jnp.float32) * s


def weight_quant(w2d, bits):
    qmax = float(2 ** (bits - 1) - 1)                       # narrow range [-qmax, qmax]
    return pl.pallas_call(
        functools.partial(_weight_quant_kernel, qmax=qmax),
        out_shape=(jax.ShapeDtypeStruct(w2d.shape, jnp.float32),
                   jax.ShapeDtypeStruct(w2d.shape, jnp.float32),
                   jax.ShapeDtypeStruct((1, 1), jnp.float32)),
        in_specs=[pl.BlockSpec(memory_space=VMEM)],
        out_specs=(pl.BlockSpec(memory_space=VMEM),
                   pl.BlockSpec(memory_space=VMEM),
                   pl.BlockSpec(memory_space=VMEM)),
    )(w2d.astype(jnp.float32))


# --------------------------------------------------------------------------
# Single fused forward kernel
# --------------------------------------------------------------------------

def _fused_forward_kernel(sw_ref, x_ref, wc_ref, bc_ref, wh_ref, bh_ref, o_ref,
                          xe_scr, act_scr, yb_scr, *, n, c, h, w, nout, pad=1):
    """quant_inp + Conv2d(3x3,SAME) + ReLU + Linear + o_quant + log_softmax.

    sw_ref : (1,1)  SMEM   conv weight scale (folded with the input scale)
    x_ref  : (n*c, h*w)    raw input (flattened per-channel rows)
    wc_ref : (nout, 9*c)   conv weight integer codes, bf16 (exact)
    bc_ref : (nout, 1)     conv bias
    wh_ref : (ncls, nout*npix_pad)  head weight pre-scattered to padded coords
                                    (zeros at halo / lane-pad columns)
    bh_ref : (1, ncls)     head bias
    o_ref  : (n, ncls)     log-softmax output
    """
    hp, wp = h + 2 * pad, w + 2 * pad
    npix = hp * wp                      # conv output in padded coords (halo = don't care)
    npix_pad = act_scr.shape[1]         # lane-dense: next multiple of 128
    margin = wp + pad                   # flat halo covering the max tap shift

    # ---- quant_inp: uint8 per-tensor fake quant over the WHOLE batch --------
    # (single block keeps the scale per-tensor; codes stay integer and the
    #  dequant scale is folded into the conv epilogue with the weight scale)
    s_x = jnp.maximum(jnp.max(x_ref[...]), 2e-16) / 255.0
    xq = jnp.clip(jnp.round(x_ref[...] / s_x), 0.0, 255.0)       # integer codes
    s_wx = sw_ref[0, 0] * s_x                                    # combined dequant scale

    # ---- zero scratch once: halo / lane-pad columns stay zero ---------------
    xe_scr[...] = jnp.zeros_like(xe_scr)
    act_scr[...] = jnp.zeros_like(act_scr)

    wc = wc_ref[...]                    # (nout, 9*c) bf16 codes
    bc = bc_ref[...]                    # (nout, 1)

    for i in range(n):                                   # static batch loop
        # scatter this sample's image rows into the zero-padded flat image (+halo)
        for r in range(h):
            dst = margin + (r + pad) * wp + pad
            xe_scr[:, dst:dst + w] = xq[i * c:(i + 1) * c, r * w:(r + 1) * w]
        # stack the 9 shifted views -> a single K = 9*c activation matrix
        for kh in range(3):
            for kw in range(3):
                t = kh * 3 + kw
                src = margin + (kh - 1) * wp + (kw - 1)
                act_scr[t * c:(t + 1) * c, 0:npix] = xe_scr[:, src:src + npix]
        # one K=36 MXU matmul on bf16 integer codes (exact), then dequant+bias+ReLU
        acc = jnp.dot(wc, act_scr[...].astype(jnp.bfloat16),
                      preferred_element_type=jnp.float32)        # (nout, npix_pad)
        y = jnp.maximum(acc * s_wx + bc, 0.0)
        # lay the sample's features lane-dense (full 384-lane unmasked stores)
        for oc in range(nout):
            yb_scr[i:i + 1, oc * npix_pad:(oc + 1) * npix_pad] = y[oc:oc + 1, :]

    # ---- head: Linear + int8 output fake-quant + log_softmax ----------------
    # head weight stays (ncls, K): lane-dense RHS, contracted on K.
    # TODO(synk): head matmul kept f32 (its LHS is not an integer-code tensor).
    z = jax.lax.dot_general(yb_scr[...], wh_ref[...],
                            dimension_numbers=(((1,), (1,)), ((), ())),
                            preferred_element_type=jnp.float32) + bh_ref[...]
    s_z = jnp.maximum(jnp.max(jnp.abs(z)), 2e-16) / 127.0
    zq = jnp.clip(jnp.round(z / s_z), -128.0, 127.0) * s_z
    m = jnp.max(zq, axis=1, keepdims=True)
    t0 = zq - m
    lse = jnp.log(jnp.sum(jnp.exp(t0), axis=1, keepdims=True))
    o_ref[...] = (t0 - lse).astype(o_ref.dtype)


# --------------------------------------------------------------------------
# Parameter preparation (one-time, offline)
# --------------------------------------------------------------------------

def prepare_params(conv_w, conv_b, lin_w, lin_b, *, H, W, w_bits=(4, 8)):
    O, C, KH, KW = conv_w.shape
    ncls = lin_w.shape[0]
    hp, wp = H + 2, W + 2
    npix = hp * wp
    npix_pad = int(pl.cdiv(npix, 128)) * 128          # 324 -> 384 (lane-dense)

    # conv weights: per-tensor 4-bit codes (exact in bf16) + scale (folded at runtime)
    ccodes, _, cscale = weight_quant(conv_w.reshape(O, C * KH * KW), w_bits[0])
    ccodes = ccodes.reshape(O, C, KH, KW)
    # layout (O, 9*C): column index = (kh*3+kw)*C + c, matching the act scratch rows
    wc = jnp.transpose(ccodes, (0, 2, 3, 1)).reshape(O, KH * KW * C).astype(jnp.bfloat16)

    # head weight: 8-bit fake-quant (dequantized), scattered into the conv
    # kernel's padded-spatial / lane-padded feature layout (zeros at halo & pad)
    _, ldeq, _ = weight_quant(lin_w, w_bits[1])
    lqr = ldeq.reshape(ncls, O, H, W)
    lpad = jnp.zeros((ncls, O, hp, wp), jnp.float32).at[:, :, 1:H + 1, 1:W + 1].set(lqr)
    lflat = lpad.reshape(ncls, O, npix)
    lflat = jnp.pad(lflat, ((0, 0), (0, 0), (0, npix_pad - npix)))
    wh = lflat.reshape(ncls, O * npix_pad)            # (ncls, 3072) lane-dense

    return dict(
        wc=wc,
        cw_scale=cscale.astype(jnp.float32),          # (1, 1)
        bc=conv_b.reshape(O, 1).astype(jnp.float32),
        wh=wh,
        bh=lin_b.reshape(1, ncls).astype(jnp.float32),
    )


# --------------------------------------------------------------------------
# Forward: one Pallas launch
# --------------------------------------------------------------------------

@jax.jit
def quant_model_forward(x, params):
    """Quant_Model.forward with input_sign=True (uint8 input quant)."""
    n, c, h, w = x.shape
    nout = params["bc"].shape[0]
    ncls = params["bh"].shape[1]
    hp, wp = h + 2, w + 2
    npix = hp * wp
    npix_pad = params["wh"].shape[1] // nout
    margin = wp + 1
    ext = int(pl.cdiv(2 * margin + npix, 128)) * 128  # flat image + halo, lane-padded

    x2 = x.reshape(n * c, h * w)                      # contiguous -> free

    kern = functools.partial(_fused_forward_kernel,
                             n=n, c=c, h=h, w=w, nout=nout)
    return pl.pallas_call(
        kern,
        out_shape=jax.ShapeDtypeStruct((n, ncls), jnp.float32),
        in_specs=[
            pl.BlockSpec(memory_space=SMEM),          # conv weight scale (1,1)
            pl.BlockSpec(memory_space=VMEM),          # x (n*c, h*w)
            pl.BlockSpec(memory_space=VMEM),          # conv codes (nout, 9*c) bf16
            pl.BlockSpec(memory_space=VMEM),          # conv bias (nout, 1)
            pl.BlockSpec(memory_space=VMEM),          # head weight (ncls, nout*npix_pad)
            pl.BlockSpec(memory_space=VMEM),          # head bias (1, ncls)
        ],
        out_specs=pl.BlockSpec(memory_space=VMEM),
        scratch_shapes=[
            pltpu.VMEM((c, ext), jnp.float32),            # padded flat image + halo
            pltpu.VMEM((9 * c, npix_pad), jnp.float32),   # stacked K=36 activations
            pltpu.VMEM((n, nout * npix_pad), jnp.float32),# lane-dense head input
        ],
        compiler_params=pltpu.CompilerParams(
            vmem_limit_bytes=32 * 1024 * 1024,            # fits v7x's 64 MiB budget
        ),
    )(params["cw_scale"], x2, params["wc"], params["bc"], params["wh"], params["bh"])


# --------------------------------------------------------------------------
# Pure-JAX reference
# --------------------------------------------------------------------------

def _fq_ref(x, bits, signed, narrow=False):
    if signed:
        qmax = float(2 ** (bits - 1) - 1)
        qmin = -qmax if narrow else -float(2 ** (bits - 1))
        amax = jnp.max(jnp.abs(x))
    else:
        qmax = float(2 ** bits - 1)
        qmin = 0.0
        amax = jnp.max(x)
    scale = jnp.maximum(amax, 2e-16) / qmax
    return jnp.clip(jnp.round(x / scale), qmin, qmax) * scale


def reference_forward(x, conv_w, conv_b, lin_w, lin_b, w_bits=(4, 8)):
    x = _fq_ref(x, 8, False)
    wq = _fq_ref(conv_w, w_bits[0], True, True)
    y = jax.lax.conv_general_dilated(
        x, wq, (1, 1), "SAME", dimension_numbers=("NCHW", "OIHW", "NCHW"))
    y = jnp.maximum(y + conv_b[None, :, None, None], 0.0)
    yf = y.reshape(y.shape[0], -1)
    lq = _fq_ref(lin_w, w_bits[1], True, True)
    z = yf @ lq.T + lin_b
    z = _fq_ref(z, 8, True)
    return jax.nn.log_softmax(z, axis=1)


# --------------------------------------------------------------------------
# Main
# --------------------------------------------------------------------------

if __name__ == "__main__":
    key = jax.random.PRNGKey(0)
    kx, k1, k2, k3, k4 = jax.random.split(key, 5)

    N, C, H, W = 2, 4, 16, 16
    OUT_CH, NUM_CLASSES = 8, 10

    x = jax.random.normal(kx, (N, C, H, W), jnp.float32)
    conv_w = jax.random.normal(k1, (OUT_CH, C, 3, 3), jnp.float32) * 0.1
    conv_b = jax.random.normal(k2, (OUT_CH,), jnp.float32) * 0.1
    lin_w = jax.random.normal(k3, (NUM_CLASSES, OUT_CH * H * W), jnp.float32) * 0.02
    lin_b = jax.random.normal(k4, (NUM_CLASSES,), jnp.float32) * 0.02

    params = prepare_params(conv_w, conv_b, lin_w, lin_b, H=H, W=W, w_bits=(4, 8))

    out = quant_model_forward(x, params)
    out = jax.block_until_ready(out)

    assert out.shape == (N, NUM_CLASSES)
    # log_softmax rows must exponentiate-sum to 1
    assert jnp.allclose(jnp.exp(out).sum(axis=1), 1.0, atol=1e-4)
    # gross-error check against pure-JAX reference (loose tol: quant rounding)
    ref = reference_forward(x, conv_w, conv_b, lin_w, lin_b)
    assert jnp.max(jnp.abs(out - ref)) < 0.2, "mismatch vs reference"

    print("KERNEL_OK")
</pallas_src>

<mosaic_0001>
module attributes {stable_mosaic.version = 11 : i64} {
  func.func @_weight_quant_kernel(%arg0: memref<8x36xf32, #tpu.memory_space<vmem>>, %arg1: memref<8x36xf32, #tpu.memory_space<vmem>>, %arg2: memref<8x36xf32, #tpu.memory_space<vmem>>, %arg3: memref<1x1xf32, #tpu.memory_space<vmem>>) attributes {dimension_semantics = [], scalar_prefetch = 0 : i64, scratch_operands = 0 : i64, tpu.core_type = #tpu.core_type<tc>} {
    %c0 = arith.constant 0 : index
    %c0_0 = arith.constant 0 : index
    %0 = vector.load %arg0[%c0, %c0_0] : memref<8x36xf32, #tpu.memory_space<vmem>>, vector<8x36xf32>
    %1 = math.absf %0 : vector<8x36xf32>
    %2 = vector.shape_cast %1 : vector<8x36xf32> to vector<1x8x36xf32>
    %cst = arith.constant dense<0xFF800000> : vector<1xf32>
    %3 = vector.multi_reduction <maximumf>, %2, %cst [1, 2] : vector<1x8x36xf32> to vector<1xf32>
    %4 = vector.shape_cast %3 : vector<1xf32> to vector<1x1x1xf32>
    %5 = vector.extract %4[0, 0, 0] : f32 from vector<1x1x1xf32>
    %cst_1 = arith.constant 2.000000e-16 : f32
    %6 = arith.maximumf %5, %cst_1 : f32
    %cst_2 = arith.constant 7.000000e+00 : f32
    %7 = arith.divf %6, %cst_2 : f32
    %8 = vector.broadcast %7 : f32 to vector<8x36xf32>
    %9 = arith.divf %0, %8 : vector<8x36xf32>
    %10 = math.roundeven %9 : vector<8x36xf32>
    %cst_3 = arith.constant -7.000000e+00 : f32
    %cst_4 = arith.constant 7.000000e+00 : f32
    %11 = vector.broadcast %cst_3 : f32 to vector<8x36xf32>
    %12 = arith.maximumf %11, %10 : vector<8x36xf32>
    %13 = vector.broadcast %cst_4 : f32 to vector<8x36xf32>
    %14 = arith.minimumf %13, %12 : vector<8x36xf32>
    %c0_5 = arith.constant 0 : index
    %c0_6 = arith.constant 0 : index
    %15 = vector.load %arg1[%c0_5, %c0_6] : memref<8x36xf32, #tpu.memory_space<vmem>>, vector<8x36xf32>
    tpu.vector_store %arg1[%c0_5, %c0_6], %14 {strides = array<i32>} : memref<8x36xf32, #tpu.memory_space<vmem>>, vector<8x36xf32>,
    %16 = vector.broadcast %7 : f32 to vector<8x36xf32>
    %17 = arith.mulf %14, %16 : vector<8x36xf32>
    %c0_7 = arith.constant 0 : index
    %c0_8 = arith.constant 0 : index
    %18 = vector.load %arg2[%c0_7, %c0_8] : memref<8x36xf32, #tpu.memory_space<vmem>>, vector<8x36xf32>
    tpu.vector_store %arg2[%c0_7, %c0_8], %17 {strides = array<i32>} : memref<8x36xf32, #tpu.memory_space<vmem>>, vector<8x36xf32>,
    %cst_9 = arith.constant 1.000000e+00 : f32
    %19 = vector.broadcast %cst_9 : f32 to vector<1x1xf32>
    %20 = vector.broadcast %7 : f32 to vector<1x1xf32>
    %21 = arith.mulf %19, %20 : vector<1x1xf32>
    %c0_10 = arith.constant 0 : index
    %c0_11 = arith.constant 0 : index
    %22 = vector.load %arg3[%c0_10, %c0_11] : memref<1x1xf32, #tpu.memory_space<vmem>>, vector<1x1xf32>
    tpu.vector_store %arg3[%c0_10, %c0_11], %21 {strides = array<i32>} : memref<1x1xf32, #tpu.memory_space<vmem>>, vector<1x1xf32>,
    return
  }
}

</mosaic_0001>

<bundles_post_ra>
// kernel: tpu_custom_call.1
= control target key start
LH: loop header
LB: loop body
LE: loop exit
PB: predicated region body
PF: predicated region fallthrough
CT: control target
= control target key end

     0   :  { %9 = vsyncpa [#allocation3], 0  ;;  %s284_s0 = inlined_call_operand.hbm [shape: f32[8,36], index: 0, kind: input, shape index: {}]   ;;  %s285_s1 = inlined_call_operand.hbm [shape: f32[8,36], index: 1, kind: output, shape index: {0}]   ;;  %s286_s2 = inlined_call_operand.hbm [shape: f32[8,36], index: 2, kind: output, shape index: {1}]   ;;  %s287_s3 = inlined_call_operand.hbm [shape: f32[1,1], index: 3, kind: output, shape index: {2}]  }
   0x1   :  { %10 = vsyncpa [#allocation4], 0 }
   0x2   :  { %11 = vsyncpa [#allocation7], 0  ;;  %s200_s12 = smov [#allocation2]   ;;  %s106_s16 = scalar_lea.hbm %s284_s0, 128 }
   0x3   :  { %s18_s13 = sshll.u32 %s200_s12, 4  ;;  %p107_p0 = scmp.ne.s32.totalorder %s284_s0, %s106_s16  ;;  %s19_s13 = int_to_ptr.vmem [resolvable:$true] %s18_s13 }
   0x4   :  { %p110_p1 = scmp.lt.u32.totalorder %s106_s16, %s284_s0 }
   0x6   :  { %p112_p2 = pnand %p110_p1, %p107_p0 }
   0x8   :  { %115 = shalt.err (!%p112_p2)
}
   0x9   :  { %s116_s21 = scalar_lea.vmem %s19_s13, 128  ;;  %p121_p4 = scmp.lt.s32.totalorder %s19_s13, %s19_s13 }
   0xa   :  { %p117_p3 = scmp.ne.s32.totalorder %s19_s13, %s116_s21  ;;  %p122_p5 = scmp.lt.s32.totalorder %s116_s21, %s116_s21 }
   0xc   :  { %p123_p6 = por %p122_p5, %p121_p4 }
   0xe   :  { %p124_p7 = pnand %p123_p6, %p117_p3 }
  0x10   :  { %127 = shalt.err (!%p124_p7)
}
  0x11   :  { %21 = dma.hbm_to_vmem [thread:$0]  %s284_s0, 128, %s19_s13, [#allocation3]  }
  0x12   :  { %194 = dma.done.wait [#allocation3], 128  }
  0x13   :  { %195 = vsyncadd [#allocation3], 4294967168  ;;  %v25_v0 = vld [vmem:[#allocation2] sm:$0xff]  ;;  %vm27_vm0 = vcmask 293888   ;;  %s201_s25 = smov 2e-16  }
  0x14   :  { %v26_v1 = vand.u32 2147483647, %v25_v0  ;;  %vm51_vm1 = vcmask 0   ;;  %s202_s27 = smov [#allocation5]   ;;  %s203_s29 = smov [#allocation6]  }
  0x15   :  { %s59_s28 = sshll.u32 %s202_s27, 4  ;;  %s69_s30 = sshll.u32 %s203_s29, 4  ;;  %s60_s28 = int_to_ptr.vmem [resolvable:$true] %s59_s28  ;;  %s70_s30 = int_to_ptr.vmem [resolvable:$true] %s69_s30 }
  0x16   :  { %v28_v2 = vsel %vm27_vm0, %v26_v1, -inf  ;;  %s204_s4 = smov [#allocation8]   ;;  %s128_s6 = scalar_lea.vmem %s60_s28, 128 }
  0x17   :  { %29 = vmax.xlane.f32.xlu0 %v28_v2  ;;  %s79_s5 = sshll.u32 %s204_s4, 4  ;;  %p129_p8 = scmp.ne.s32.totalorder %s60_s28, %s128_s6  ;;  %s239_s5 = int_to_ptr.vmem [resolvable:$true] %s79_s5 }
  0x18   :  { %p133_p9 = scmp.lt.s32.totalorder %s60_s28, %s60_s28  ;;  %p134_p10 = scmp.lt.s32.totalorder %s128_s6, %s128_s6 }
  0x1a   :  { %p135_p11 = por %p134_p10, %p133_p9 }
  0x1c   :  { %p136_p12 = pnand %p135_p11, %p129_p8 }
  0xa4   :  { %v30_v3 = vpop.xlane.xlu0 %29 }
  0xa5   :  { %v31_v4 = vrot.slane %v30_v3, 4 }
  0xa7   :  { %v32_v5 = vmax.f32 %v30_v3, %v31_v4 }
  0xa9   :  { %v33_v6 = vrot.slane %v32_v5, 2 }
  0xab   :  { %v34_v7 = vmax.f32 %v32_v5, %v33_v6 }
  0xad   :  { %v35_v8 = vrot.slane %v34_v7, 1 }
  0xaf   :  { %v36_v9 = vmax.f32 %v34_v7, %v35_v8 }
  0xb1   :  { %96 = vpush %v36_v9 }
  0xe2   :  { %s97_s24 = spop %96 }
  0xe3   :  { %s38_s26 = smax.f32 %s201_s25, %s97_s24 }
  0xe4   :  { %s41_s0 = smul.f32 0.14285715, %s38_s26 }
  0xe6   :  { %v42_v10 = vstv %s41_s0 }
  0xe7   :  { %104 = vrcp.f32 %v42_v10  ;;  %52 = vst.msk [vmem:[#allocation8] sm:$0x1] %vm51_vm1, %v42_v10 }
  0xf1   :  { %v105_v11 = vpop.eup %104 }
  0xf2   :  { %v44_v12 = vmul.f32 %v105_v11, %v25_v0 }
  0xf4   :  { %v98_v13 = vround.rtne.f32 %v44_v12 }
  0xf6   :  { %v95_v14 = vclamps-f32 %v98_v13, 7.0 }
  0xf8   :  { %v49_v15 = vmul.f32 %v95_v14, %v42_v10  ;;  %48 = vst.msk [vmem:[#allocation5] sm:$0xff] %vm27_vm0, %v95_v14 }
  0xf9   :  { %139 = shalt.err (!%p136_p12)
}
  0xfa   :  { %s140_s9 = scalar_lea.hbm %s285_s1, 128 }
  0xfb   :  { %p141_p13 = scmp.ne.s32.totalorder %s285_s1, %s140_s9  ;;  %p144_p0 = scmp.lt.u32.totalorder %s140_s9, %s285_s1 }
  0xfd   :  { %p146_p1 = pnand %p144_p0, %p141_p13 }
  0xff   :  { %149 = shalt.err (!%p146_p1)
}
 0x100   :  { %62 = dma.vmem_to_hbm [thread:$0]  %s60_s28, 128, %s285_s1, [#allocation4]   ;;  %50 = vst.msk [vmem:[#allocation6] sm:$0xff] %vm27_vm0, %v49_v15 }
 0x101   :  { %s150_s16 = scalar_lea.vmem %s70_s30, 128  ;;  %p155_p3 = scmp.lt.s32.totalorder %s70_s30, %s70_s30 }
 0x102   :  { %p151_p2 = scmp.ne.s32.totalorder %s70_s30, %s150_s16  ;;  %p156_p4 = scmp.lt.s32.totalorder %s150_s16, %s150_s16 }
 0x104   :  { %p157_p5 = por %p156_p4, %p155_p3 }
 0x106   :  { %p158_p6 = pnand %p157_p5, %p151_p2 }
 0x108   :  { %161 = shalt.err (!%p158_p6)
}
 0x109   :  { %s162_s19 = scalar_lea.hbm %s286_s2, 128 }
 0x10a   :  { %p163_p7 = scmp.ne.s32.totalorder %s286_s2, %s162_s19  ;;  %p166_p8 = scmp.lt.u32.totalorder %s162_s19, %s286_s2 }
 0x10c   :  { %p168_p9 = pnand %p166_p8, %p163_p7 }
 0x10e   :  { %171 = shalt.err (!%p168_p9)
}
 0x10f   :  { %72 = dma.vmem_to_hbm [thread:$0]  %s70_s30, 128, %s286_s2, [#allocation7]  }
 0x110   :  { %s172_s25 = scalar_lea.vmem %s239_s5, 16  ;;  %s176_s26 = scalar_lea.vmem %s239_s5, 32 }
 0x111   :  { %p173_p10 = scmp.ne.s32.totalorder %s239_s5, %s172_s25  ;;  %p177_p11 = scmp.lt.s32.totalorder %s239_s5, %s239_s5 }
 0x112   :  { %p178_p12 = scmp.lt.s32.totalorder %s176_s26, %s172_s25 }
 0x114   :  { %p179_p13 = por %p178_p12, %p177_p11 }
 0x116   :  { %p180_p0 = pnand %p179_p13, %p173_p10 }
 0x118   :  { %183 = shalt.err (!%p180_p0)
}
 0x119   :  { %s184_s28 = scalar_lea.hbm %s287_s3, 16 }
 0x11a   :  { %p185_p1 = scmp.ne.s32.totalorder %s287_s3, %s184_s28  ;;  %p188_p2 = scmp.lt.u32.totalorder %s184_s28, %s287_s3 }
 0x11c   :  { %p190_p3 = pnand %p188_p2, %p185_p1 }
 0x11e   :  { %193 = shalt.err (!%p190_p3)
}
 0x11f   :  { %82 = dma.vmem_to_hbm [thread:$0]  %s239_s5, 16, %s287_s3, [#allocation7]  }
 0x120   :  { %196 = dma.done.wait [#allocation4], 128  }
 0x121   :  { %197 = vsyncadd [#allocation4], 4294967168 }
 0x122   :  { %198 = dma.done.wait [#allocation7], 144  }
 0x123   :  { %199 = vsyncadd [#allocation7], 4294967152 }
 0x124   :  { %92 = vsyncpa [#allocation3], 1 }
 0x125   :  { %93 = vsyncpa [#allocation4], 1 }
 0x126   :  { %94 = vsyncpa [#allocation7], 1 }

</bundles_post_ra>
